<compile_context>
chip_gen: v7x
topology: tpu7x:2x2x1
jax: 0.10.0
libtpu: 0.0.40
codegen_flags: <defaults>
</compile_context>

<pallas_src>
import functools

import jax
import jax.numpy as jnp
import numpy as np
from jax.experimental import pallas as pl
from jax.experimental.pallas import tpu as pltpu

_CHUNK_ROWS = 32     # rows per inner chunk in the dense kernel (32*128 px)
_CHUNK_LANES = 512   # lanes per inner chunk in the flat fallback kernel
_MAX_FLAT_CHUNKS = 64


def _dice_kernel_dense(score_ref, label_ref, acc_ref, *, n_classes,
                       apply_softmax, rows_valid, block_rows, chunk_rows):
    """Dense path (HW % 128 == 0).

    score_ref : VMEM [1, C, TR, 128]   (input dtype, e.g. f32/bf16)
    label_ref : VMEM [1, 1, TR, 128]   int32
    acc_ref   : VMEM [1, 3, C, 128]    f32 resident per-batch accumulator
                (k=0 intersect, k=1 y_sum, k=2 z_sum; per-lane partials)
    """
    t = pl.program_id(1)

    @pl.when(t == 0)
    def _init():
        acc_ref[...] = jnp.zeros_like(acc_ref)

    need_mask = (rows_valid % block_rows) != 0   # padding rows exist?

    for r0 in range(0, block_rows, chunk_rows):
        rc = min(chunk_rows, block_rows - r0)

        lab = label_ref[0, 0, r0:r0 + rc, :]                     # (rc, 128)
        if need_mask:
            row = jax.lax.broadcasted_iota(jnp.int32, (rc, 128), 0)
            valid = (t * block_rows + r0 + row) < rows_valid
            # clamp padding labels to an out-of-range class -> one-hot == 0
            lab = jnp.where(valid, lab, n_classes)

        def ld(c, _r0=r0, _rc=rc):
            # re-read from the ref per statement; keeps live ranges small
            return score_ref[0, c, _r0:_r0 + _rc, :].astype(jnp.float32)

        if apply_softmax:
            m = ld(0)
            for c in range(1, n_classes):
                m = jnp.maximum(m, ld(c))
            den = jnp.exp(ld(0) - m)
            for c in range(1, n_classes):
                den = den + jnp.exp(ld(c) - m)
            inv_den = 1.0 / den                                   # exact

        for c in range(n_classes):
            s = ld(c)
            if apply_softmax:
                s = jnp.exp(s - m) * inv_den
            if need_mask:
                s = jnp.where(valid, s, 0.0)
            onehot = (lab == c).astype(jnp.float32)
            # fold the pixel reduction down to (128,) before the RMW
            acc_ref[0, 0, c, :] = acc_ref[0, 0, c, :] + jnp.sum(s * onehot, axis=0)
            acc_ref[0, 1, c, :] = acc_ref[0, 1, c, :] + jnp.sum(onehot, axis=0)
            acc_ref[0, 2, c, :] = acc_ref[0, 2, c, :] + jnp.sum(s * s, axis=0)


def _dice_kernel_flat(score_ref, label_ref, acc_ref, *, n_classes,
                      apply_softmax, hw, block_lanes, chunk_lanes):
    """Fallback path (HW % 128 != 0), flat (C, tile) layout.

    score_ref : VMEM [1, C, TILE]
    label_ref : VMEM [1, 1, TILE] int32
    acc_ref   : VMEM [1, 3, C, 128] f32 (totals written into lane 0 only)
    """
    t = pl.program_id(1)

    @pl.when(t == 0)
    def _init():
        acc_ref[...] = jnp.zeros_like(acc_ref)

    C = n_classes
    for l0 in range(0, block_lanes, chunk_lanes):
        lc = min(chunk_lanes, block_lanes - l0)

        lab = label_ref[0, :, l0:l0 + lc]                        # (1, lc)
        lane = jax.lax.broadcasted_iota(jnp.int32, (1, lc), 1)
        valid = (t * block_lanes + l0 + lane) < hw               # (1, lc)
        lab = jnp.where(valid, lab, C)

        s = score_ref[0, :, l0:l0 + lc].astype(jnp.float32)      # (C, lc)
        if apply_softmax:
            m = jnp.max(s, axis=0, keepdims=True)
            e = jnp.exp(s - m)
            s = e * (1.0 / jnp.sum(e, axis=0, keepdims=True))
        s = jnp.where(valid, s, 0.0)

        onehot = (jax.lax.broadcasted_iota(jnp.int32, (C, lc), 0)
                  == lab).astype(jnp.float32)

        acc_ref[0, 0, :, 0:1] = acc_ref[0, 0, :, 0:1] + jnp.sum(
            s * onehot, axis=-1, keepdims=True)
        acc_ref[0, 1, :, 0:1] = acc_ref[0, 1, :, 0:1] + jnp.sum(
            onehot, axis=-1, keepdims=True)
        acc_ref[0, 2, :, 0:1] = acc_ref[0, 2, :, 0:1] + jnp.sum(
            s * s, axis=-1, keepdims=True)


def dice_loss(inputs, target, n_classes, weight=None, softmax=False,
              block_bytes=4 * 1024 * 1024):
    """Pallas TPU implementation of DiceLoss.forward (returns scalar loss)."""
    N, C, H, W = inputs.shape
    assert C == n_classes, f"predict channels {C} != n_classes {n_classes}"
    HW = H * W

    # Labels: keep narrow/int end-to-end; only convert when strictly needed.
    target = target.reshape(N, H, W)
    if target.dtype != jnp.int32:
        target = target.astype(jnp.int32)

    in_itemsize = jnp.dtype(inputs.dtype).itemsize
    lab_itemsize = 4

    dense = (HW % 128 == 0)
    if dense:
        R = HW // 128
        per_row_bytes = 128 * (C * in_itemsize + lab_itemsize)
        gran = max(8, 32 // in_itemsize)          # sublane granule per dtype
        tr = int(block_bytes) // per_row_bytes
        if tr >= R:
            tr = R                                # whole image per grid step
        else:
            tr = min(R, max(gran, (tr // gran) * gran))
        num_t = pl.cdiv(R, tr)

        score = inputs.reshape(N, C, R, 128)      # layout-free reshape
        labels = target.reshape(N, 1, R, 128)

        kernel = functools.partial(
            _dice_kernel_dense, n_classes=C, apply_softmax=softmax,
            rows_valid=R, block_rows=tr, chunk_rows=_CHUNK_ROWS)
        in_specs = [
            pl.BlockSpec((1, C, tr, 128), lambda n, t: (n, 0, t, 0)),
            pl.BlockSpec((1, 1, tr, 128), lambda n, t: (n, 0, t, 0)),
        ]
        score_block_bytes = C * tr * 128 * in_itemsize
        label_block_bytes = tr * 128 * lab_itemsize
    else:
        hw128 = pl.cdiv(HW, 128) * 128
        per_lane_bytes = C * in_itemsize + lab_itemsize
        tile = int(block_bytes) // per_lane_bytes
        tile = min(tile, _MAX_FLAT_CHUNKS * _CHUNK_LANES)
        tile = max(128, (tile // 128) * 128)
        tile = min(tile, hw128)
        num_t = pl.cdiv(HW, tile)

        score = inputs.reshape(N, C, HW)
        labels = target.reshape(N, 1, HW)

        kernel = functools.partial(
            _dice_kernel_flat, n_classes=C, apply_softmax=softmax,
            hw=HW, block_lanes=tile, chunk_lanes=min(_CHUNK_LANES, tile))
        in_specs = [
            pl.BlockSpec((1, C, tile), lambda n, t: (n, 0, t)),
            pl.BlockSpec((1, 1, tile), lambda n, t: (n, 0, t)),
        ]
        score_block_bytes = C * tile * in_itemsize
        label_block_bytes = tile * lab_itemsize

    acc_block_bytes = 3 * C * 128 * 4
    pipeline_bytes = 2 * (score_block_bytes + label_block_bytes
                          + acc_block_bytes)
    vmem_limit = int(min(48 * 2**20,
                         max(32 * 2**20, pipeline_bytes + (8 << 20))))

    cost = pl.CostEstimate(
        flops=int(N * HW * C * (7 + (10 if softmax else 0))),
        transcendentals=int(2 * N * HW * C) if softmax else 0,
        bytes_accessed=int(N * HW * (C * in_itemsize + lab_itemsize)
                           + N * acc_block_bytes),
    )

    acc = pl.pallas_call(
        kernel,
        out_shape=jax.ShapeDtypeStruct((N, 3, C, 128), jnp.float32),
        grid=(N, num_t),
        in_specs=in_specs,
        out_specs=pl.BlockSpec((1, 3, C, 128), lambda n, t: (n, 0, 0, 0)),
        compiler_params=pltpu.CompilerParams(
            dimension_semantics=("parallel", "arbitrary"),
            vmem_limit_bytes=vmem_limit),
        cost_estimate=cost,
    )(score, labels)

    # Tiny finalize on (3, C)-sized data: sum over batch and the 128 lanes.
    totals = jnp.sum(acc, axis=(0, 3))            # (3, C)
    intersect, y_sum, z_sum = totals[0], totals[1], totals[2]

    smooth = jnp.float32(1e-5)
    dice = 1.0 - (2.0 * intersect + smooth) / (z_sum + y_sum + smooth)

    if weight is None:
        weight = [1.0] * n_classes
    w = jnp.asarray(weight, jnp.float32)
    return jnp.sum(dice * w) / jnp.float32(n_classes)


def _dice_loss_ref(inputs, target, n_classes, weight=None, softmax=False):
    """Pure-JAX reference mirroring the PyTorch module."""
    if softmax:
        inputs = jax.nn.softmax(inputs.astype(jnp.float32), axis=1)
    onehot = jnp.stack([(target == i).astype(jnp.float32)
                        for i in range(n_classes)], axis=1)
    if weight is None:
        weight = [1.0] * n_classes
    smooth = 1e-5
    loss = 0.0
    for i in range(n_classes):
        s = inputs[:, i].astype(jnp.float32)
        t = onehot[:, i]
        intersect = jnp.sum(s * t)
        y_sum = jnp.sum(t * t)
        z_sum = jnp.sum(s * s)
        dice = 1.0 - (2.0 * intersect + smooth) / (z_sum + y_sum + smooth)
        loss = loss + dice * weight[i]
    return loss / n_classes


if __name__ == "__main__":
    key = jax.random.PRNGKey(0)
    k1, k2, k3, k4, k5, k6 = jax.random.split(key, 6)

    # Case 1: dense path (HW % 128 == 0), softmax=True, f32, whole-image block.
    n_classes = 4
    N, H, W = 2, 16, 16
    x1 = jax.random.normal(k1, (N, n_classes, H, W), dtype=jnp.float32)
    t1 = jax.random.randint(k2, (N, H, W), 0, n_classes, dtype=jnp.int32)
    out1 = jax.block_until_ready(dice_loss(x1, t1, n_classes, softmax=True))
    ref1 = _dice_loss_ref(x1, t1, n_classes, softmax=True)
    np.testing.assert_allclose(np.asarray(out1), np.asarray(ref1),
                               rtol=1e-4, atol=1e-6)

    # Case 2: flat fallback (HW % 128 != 0), multi-tile + ragged mask,
    # class weights, softmax=True.
    n2 = 3
    N2, H2, W2 = 2, 12, 12                     # HW = 144 -> ragged, 2 tiles
    x2 = jax.random.normal(k3, (N2, n2, H2, W2), dtype=jnp.float32)
    t2 = jax.random.randint(k4, (N2, H2, W2), 0, n2, dtype=jnp.int32)
    w2 = [0.2, 0.3, 0.5]
    out2 = jax.block_until_ready(
        dice_loss(x2, t2, n2, weight=w2, softmax=True, block_bytes=2048))
    ref2 = _dice_loss_ref(x2, t2, n2, weight=w2, softmax=True)
    np.testing.assert_allclose(np.asarray(out2), np.asarray(ref2),
                               rtol=1e-4, atol=1e-6)

    # Case 3: dense path, bf16 inputs, C=9, multiple row-tiles with a ragged
    # last tile, class weights, no softmax.
    n3 = 9
    N3, H3, W3 = 2, 48, 64                     # HW = 3072 -> R = 24 rows
    x3 = jax.random.normal(k5, (N3, n3, H3, W3), dtype=jnp.bfloat16)
    t3 = jax.random.randint(k6, (N3, H3, W3), 0, n3, dtype=jnp.int32)
    w3 = [float(v) for v in np.linspace(0.5, 1.5, n3)]
    out3 = jax.block_until_ready(
        dice_loss(x3, t3, n3, weight=w3, softmax=False, block_bytes=48 * 1024))
    ref3 = _dice_loss_ref(x3, t3, n3, weight=w3, softmax=False)
    np.testing.assert_allclose(np.asarray(out3), np.asarray(ref3),
                               rtol=1e-3, atol=1e-5)

    print("KERNEL_OK")
</pallas_src>

<mosaic_0001>
module attributes {stable_mosaic.version = 11 : i64} {
  func.func @_dice_kernel_dense(%arg0: i32, %arg1: i32, %arg2: memref<1x4x2x128xf32, #tpu.memory_space<vmem>>, %arg3: memref<1x1x2x128xi32, #tpu.memory_space<vmem>>, %arg4: memref<1x3x4x128xf32, #tpu.memory_space<vmem>>) attributes {dimension_semantics = [#tpu.dimension_semantics<parallel>, #tpu.dimension_semantics<arbitrary>], iteration_bounds = array<i64: 2, 1>, scalar_prefetch = 0 : i64, scratch_operands = 0 : i64, tpu.core_type = #tpu.core_type<tc>, window_params = [{transform_indices = @transform_0, window_bounds = array<i64: 1, 4, 2, 128>}, {transform_indices = @transform_1, window_bounds = array<i64: 1, 1, 2, 128>}, {transform_indices = @transform_2, window_bounds = array<i64: 1, 3, 4, 128>}]} {
    %c0_i32 = arith.constant 0 : i32
    %0 = arith.cmpi eq, %arg1, %c0_i32 : i32
    %1 = arith.extui %0 : i1 to i32
    %c0_i32_0 = arith.constant 0 : i32
    %2 = arith.cmpi ne, %1, %c0_i32_0 : i32
    scf.if %2 {
      %cst_158 = arith.constant 0.000000e+00 : f32
      %165 = vector.broadcast %cst_158 : f32 to vector<1x3x4x128xf32>
      %c0_159 = arith.constant 0 : index
      %c0_160 = arith.constant 0 : index
      %c0_161 = arith.constant 0 : index
      %c0_162 = arith.constant 0 : index
      %166 = vector.load %arg4[%c0_159, %c0_160, %c0_161, %c0_162] : memref<1x3x4x128xf32, #tpu.memory_space<vmem>>, vector<1x3x4x128xf32>
      tpu.vector_store %arg4[%c0_159, %c0_160, %c0_161, %c0_162], %165 {strides = array<i32>} : memref<1x3x4x128xf32, #tpu.memory_space<vmem>>, vector<1x3x4x128xf32>,
    } else {
    }
    %c0 = arith.constant 0 : index
    %c0_1 = arith.constant 0 : index
    %c0_2 = arith.constant 0 : index
    %c0_3 = arith.constant 0 : index
    %3 = vector.load %arg3[%c0, %c0_1, %c0_2, %c0_3] : memref<1x1x2x128xi32, #tpu.memory_space<vmem>>, vector<1x1x2x128xi32>
    %4 = vector.shape_cast %3 : vector<1x1x2x128xi32> to vector<2x128xi32>
    %c0_4 = arith.constant 0 : index
    %c0_5 = arith.constant 0 : index
    %c0_6 = arith.constant 0 : index
    %c0_7 = arith.constant 0 : index
    %5 = vector.load %arg2[%c0_4, %c0_5, %c0_6, %c0_7] : memref<1x4x2x128xf32, #tpu.memory_space<vmem>>, vector<1x1x2x128xf32>
    %6 = vector.shape_cast %5 : vector<1x1x2x128xf32> to vector<2x128xf32>
    %c0_8 = arith.constant 0 : index
    %c1 = arith.constant 1 : index
    %c0_9 = arith.constant 0 : index
    %c0_10 = arith.constant 0 : index
    %7 = vector.load %arg2[%c0_8, %c1, %c0_9, %c0_10] : memref<1x4x2x128xf32, #tpu.memory_space<vmem>>, vector<1x1x2x128xf32>
    %8 = vector.shape_cast %7 : vector<1x1x2x128xf32> to vector<2x128xf32>
    %9 = arith.maximumf %6, %8 : vector<2x128xf32>
    %c0_11 = arith.constant 0 : index
    %c2 = arith.constant 2 : index
    %c0_12 = arith.constant 0 : index
    %c0_13 = arith.constant 0 : index
    %10 = vector.load %arg2[%c0_11, %c2, %c0_12, %c0_13] : memref<1x4x2x128xf32, #tpu.memory_space<vmem>>, vector<1x1x2x128xf32>
    %11 = vector.shape_cast %10 : vector<1x1x2x128xf32> to vector<2x128xf32>
    %12 = arith.maximumf %9, %11 : vector<2x128xf32>
    %c0_14 = arith.constant 0 : index
    %c3 = arith.constant 3 : index
    %c0_15 = arith.constant 0 : index
    %c0_16 = arith.constant 0 : index
    %13 = vector.load %arg2[%c0_14, %c3, %c0_15, %c0_16] : memref<1x4x2x128xf32, #tpu.memory_space<vmem>>, vector<1x1x2x128xf32>
    %14 = vector.shape_cast %13 : vector<1x1x2x128xf32> to vector<2x128xf32>
    %15 = arith.maximumf %12, %14 : vector<2x128xf32>
    %c0_17 = arith.constant 0 : index
    %c0_18 = arith.constant 0 : index
    %c0_19 = arith.constant 0 : index
    %c0_20 = arith.constant 0 : index
    %16 = vector.load %arg2[%c0_17, %c0_18, %c0_19, %c0_20] : memref<1x4x2x128xf32, #tpu.memory_space<vmem>>, vector<1x1x2x128xf32>
    %17 = vector.shape_cast %16 : vector<1x1x2x128xf32> to vector<2x128xf32>
    %18 = arith.subf %17, %15 : vector<2x128xf32>
    %19 = math.exp %18 : vector<2x128xf32>
    %c0_21 = arith.constant 0 : index
    %c1_22 = arith.constant 1 : index
    %c0_23 = arith.constant 0 : index
    %c0_24 = arith.constant 0 : index
    %20 = vector.load %arg2[%c0_21, %c1_22, %c0_23, %c0_24] : memref<1x4x2x128xf32, #tpu.memory_space<vmem>>, vector<1x1x2x128xf32>
    %21 = vector.shape_cast %20 : vector<1x1x2x128xf32> to vector<2x128xf32>
    %22 = arith.subf %21, %15 : vector<2x128xf32>
    %23 = math.exp %22 : vector<2x128xf32>
    %24 = arith.addf %19, %23 : vector<2x128xf32>
    %c0_25 = arith.constant 0 : index
    %c2_26 = arith.constant 2 : index
    %c0_27 = arith.constant 0 : index
    %c0_28 = arith.constant 0 : index
    %25 = vector.load %arg2[%c0_25, %c2_26, %c0_27, %c0_28] : memref<1x4x2x128xf32, #tpu.memory_space<vmem>>, vector<1x1x2x128xf32>
    %26 = vector.shape_cast %25 : vector<1x1x2x128xf32> to vector<2x128xf32>
    %27 = arith.subf %26, %15 : vector<2x128xf32>
    %28 = math.exp %27 : vector<2x128xf32>
    %29 = arith.addf %24, %28 : vector<2x128xf32>
    %c0_29 = arith.constant 0 : index
    %c3_30 = arith.constant 3 : index
    %c0_31 = arith.constant 0 : index
    %c0_32 = arith.constant 0 : index
    %30 = vector.load %arg2[%c0_29, %c3_30, %c0_31, %c0_32] : memref<1x4x2x128xf32, #tpu.memory_space<vmem>>, vector<1x1x2x128xf32>
    %31 = vector.shape_cast %30 : vector<1x1x2x128xf32> to vector<2x128xf32>
    %32 = arith.subf %31, %15 : vector<2x128xf32>
    %33 = math.exp %32 : vector<2x128xf32>
    %34 = arith.addf %29, %33 : vector<2x128xf32>
    %cst = arith.constant 1.000000e+00 : f32
    %35 = vector.broadcast %cst : f32 to vector<2x128xf32>
    %36 = arith.divf %35, %34 : vector<2x128xf32>
    %c0_33 = arith.constant 0 : index
    %c0_34 = arith.constant 0 : index
    %c0_35 = arith.constant 0 : index
    %c0_36 = arith.constant 0 : index
    %37 = vector.load %arg2[%c0_33, %c0_34, %c0_35, %c0_36] : memref<1x4x2x128xf32, #tpu.memory_space<vmem>>, vector<1x1x2x128xf32>
    %38 = vector.shape_cast %37 : vector<1x1x2x128xf32> to vector<2x128xf32>
    %39 = arith.subf %38, %15 : vector<2x128xf32>
    %40 = math.exp %39 : vector<2x128xf32>
    %41 = arith.mulf %40, %36 : vector<2x128xf32>
    %c0_i32_37 = arith.constant 0 : i32
    %42 = vector.broadcast %c0_i32_37 : i32 to vector<2x128xi32>
    %43 = arith.cmpi eq, %4, %42 : vector<2x128xi32>
    %44 = arith.extui %43 : vector<2x128xi1> to vector<2x128xi32>
    %45 = arith.sitofp %44 : vector<2x128xi32> to vector<2x128xf32>
    %c0_38 = arith.constant 0 : index
    %c0_39 = arith.constant 0 : index
    %c0_40 = arith.constant 0 : index
    %c0_41 = arith.constant 0 : index
    %46 = vector.load %arg4[%c0_38, %c0_39, %c0_40, %c0_41] : memref<1x3x4x128xf32, #tpu.memory_space<vmem>>, vector<1x1x1x128xf32>
    %47 = vector.shape_cast %46 : vector<1x1x1x128xf32> to vector<128xf32>
    %48 = arith.mulf %41, %45 : vector<2x128xf32>
    %cst_42 = arith.constant dense<0.000000e+00> : vector<128xf32>
    %49 = vector.multi_reduction <add>, %48, %cst_42 [0] : vector<2x128xf32> to vector<128xf32>
    %50 = arith.addf %47, %49 : vector<128xf32>
    %c0_43 = arith.constant 0 : index
    %c0_44 = arith.constant 0 : index
    %c0_45 = arith.constant 0 : index
    %c0_46 = arith.constant 0 : index
    %51 = vector.load %arg4[%c0_43, %c0_44, %c0_45, %c0_46] : memref<1x3x4x128xf32, #tpu.memory_space<vmem>>, vector<1x1x1x128xf32>
    %52 = vector.shape_cast %51 : vector<1x1x1x128xf32> to vector<128xf32>
    %53 = vector.shape_cast %50 : vector<128xf32> to vector<1x1x1x128xf32>
    tpu.vector_store %arg4[%c0_43, %c0_44, %c0_45, %c0_46], %53 {strides = array<i32>} : memref<1x3x4x128xf32, #tpu.memory_space<vmem>>, vector<1x1x1x128xf32>,
    %c0_47 = arith.constant 0 : index
    %c1_48 = arith.constant 1 : index
    %c0_49 = arith.constant 0 : index
    %c0_50 = arith.constant 0 : index
    %54 = vector.load %arg4[%c0_47, %c1_48, %c0_49, %c0_50] : memref<1x3x4x128xf32, #tpu.memory_space<vmem>>, vector<1x1x1x128xf32>
    %55 = vector.shape_cast %54 : vector<1x1x1x128xf32> to vector<128xf32>
    %cst_51 = arith.constant dense<0.000000e+00> : vector<128xf32>
    %56 = vector.multi_reduction <add>, %45, %cst_51 [0] : vector<2x128xf32> to vector<128xf32>
    %57 = arith.addf %55, %56 : vector<128xf32>
    %c0_52 = arith.constant 0 : index
    %c1_53 = arith.constant 1 : index
    %c0_54 = arith.constant 0 : index
    %c0_55 = arith.constant 0 : index
    %58 = vector.load %arg4[%c0_52, %c1_53, %c0_54, %c0_55] : memref<1x3x4x128xf32, #tpu.memory_space<vmem>>, vector<1x1x1x128xf32>
    %59 = vector.shape_cast %58 : vector<1x1x1x128xf32> to vector<128xf32>
    %60 = vector.shape_cast %57 : vector<128xf32> to vector<1x1x1x128xf32>
    tpu.vector_store %arg4[%c0_52, %c1_53, %c0_54, %c0_55], %60 {strides = array<i32>} : memref<1x3x4x128xf32, #tpu.memory_space<vmem>>, vector<1x1x1x128xf32>,
    %c0_56 = arith.constant 0 : index
    %c2_57 = arith.constant 2 : index
    %c0_58 = arith.constant 0 : index
    %c0_59 = arith.constant 0 : index
    %61 = vector.load %arg4[%c0_56, %c2_57, %c0_58, %c0_59] : memref<1x3x4x128xf32, #tpu.memory_space<vmem>>, vector<1x1x1x128xf32>
    %62 = vector.shape_cast %61 : vector<1x1x1x128xf32> to vector<128xf32>
    %63 = arith.mulf %41, %41 : vector<2x128xf32>
    %cst_60 = arith.constant dense<0.000000e+00> : vector<128xf32>
    %64 = vector.multi_reduction <add>, %63, %cst_60 [0] : vector<2x128xf32> to vector<128xf32>
    %65 = arith.addf %62, %64 : vector<128xf32>
    %c0_61 = arith.constant 0 : index
    %c2_62 = arith.constant 2 : index
    %c0_63 = arith.constant 0 : index
    %c0_64 = arith.constant 0 : index
    %66 = vector.load %arg4[%c0_61, %c2_62, %c0_63, %c0_64] : memref<1x3x4x128xf32, #tpu.memory_space<vmem>>, vector<1x1x1x128xf32>
    %67 = vector.shape_cast %66 : vector<1x1x1x128xf32> to vector<128xf32>
    %68 = vector.shape_cast %65 : vector<128xf32> to vector<1x1x1x128xf32>
    tpu.vector_store %arg4[%c0_61, %c2_62, %c0_63, %c0_64], %68 {strides = array<i32>} : memref<1x3x4x128xf32, #tpu.memory_space<vmem>>, vector<1x1x1x128xf32>,
    %c0_65 = arith.constant 0 : index
    %c1_66 = arith.constant 1 : index
    %c0_67 = arith.constant 0 : index
    %c0_68 = arith.constant 0 : index
    %69 = vector.load %arg2[%c0_65, %c1_66, %c0_67, %c0_68] : memref<1x4x2x128xf32, #tpu.memory_space<vmem>>, vector<1x1x2x128xf32>
    %70 = vector.shape_cast %69 : vector<1x1x2x128xf32> to vector<2x128xf32>
    %71 = arith.subf %70, %15 : vector<2x128xf32>
    %72 = math.exp %71 : vector<2x128xf32>
    %73 = arith.mulf %72, %36 : vector<2x128xf32>
    %c1_i32 = arith.constant 1 : i32
    %74 = vector.broadcast %c1_i32 : i32 to vector<2x128xi32>
    %75 = arith.cmpi eq, %4, %74 : vector<2x128xi32>
    %76 = arith.extui %75 : vector<2x128xi1> to vector<2x128xi32>
    %77 = arith.sitofp %76 : vector<2x128xi32> to vector<2x128xf32>
    %c0_69 = arith.constant 0 : index
    %c0_70 = arith.constant 0 : index
    %c1_71 = arith.constant 1 : index
    %c0_72 = arith.constant 0 : index
    %78 = vector.load %arg4[%c0_69, %c0_70, %c1_71, %c0_72] : memref<1x3x4x128xf32, #tpu.memory_space<vmem>>, vector<1x1x1x128xf32>
    %79 = vector.shape_cast %78 : vector<1x1x1x128xf32> to vector<128xf32>
    %80 = arith.mulf %73, %77 : vector<2x128xf32>
    %cst_73 = arith.constant dense<0.000000e+00> : vector<128xf32>
    %81 = vector.multi_reduction <add>, %80, %cst_73 [0] : vector<2x128xf32> to vector<128xf32>
    %82 = arith.addf %79, %81 : vector<128xf32>
    %c0_74 = arith.constant 0 : index
    %c0_75 = arith.constant 0 : index
    %c1_76 = arith.constant 1 : index
    %c0_77 = arith.constant 0 : index
    %83 = vector.load %arg4[%c0_74, %c0_75, %c1_76, %c0_77] : memref<1x3x4x128xf32, #tpu.memory_space<vmem>>, vector<1x1x1x128xf32>
    %84 = vector.shape_cast %83 : vector<1x1x1x128xf32> to vector<128xf32>
    %85 = vector.shape_cast %82 : vector<128xf32> to vector<1x1x1x128xf32>
    tpu.vector_store %arg4[%c0_74, %c0_75, %c1_76, %c0_77], %85 {strides = array<i32>} : memref<1x3x4x128xf32, #tpu.memory_space<vmem>>, vector<1x1x1x128xf32>,
    %c0_78 = arith.constant 0 : index
    %c1_79 = arith.constant 1 : index
    %c1_80 = arith.constant 1 : index
    %c0_81 = arith.constant 0 : index
    %86 = vector.load %arg4[%c0_78, %c1_79, %c1_80, %c0_81] : memref<1x3x4x128xf32, #tpu.memory_space<vmem>>, vector<1x1x1x128xf32>
    %87 = vector.shape_cast %86 : vector<1x1x1x128xf32> to vector<128xf32>
    %cst_82 = arith.constant dense<0.000000e+00> : vector<128xf32>
    %88 = vector.multi_reduction <add>, %77, %cst_82 [0] : vector<2x128xf32> to vector<128xf32>
    %89 = arith.addf %87, %88 : vector<128xf32>
    %c0_83 = arith.constant 0 : index
    %c1_84 = arith.constant 1 : index
    %c1_85 = arith.constant 1 : index
    %c0_86 = arith.constant 0 : index
    %90 = vector.load %arg4[%c0_83, %c1_84, %c1_85, %c0_86] : memref<1x3x4x128xf32, #tpu.memory_space<vmem>>, vector<1x1x1x128xf32>
    %91 = vector.shape_cast %90 : vector<1x1x1x128xf32> to vector<128xf32>
    %92 = vector.shape_cast %89 : vector<128xf32> to vector<1x1x1x128xf32>
    tpu.vector_store %arg4[%c0_83, %c1_84, %c1_85, %c0_86], %92 {strides = array<i32>} : memref<1x3x4x128xf32, #tpu.memory_space<vmem>>, vector<1x1x1x128xf32>,
    %c0_87 = arith.constant 0 : index
    %c2_88 = arith.constant 2 : index
    %c1_89 = arith.constant 1 : index
    %c0_90 = arith.constant 0 : index
    %93 = vector.load %arg4[%c0_87, %c2_88, %c1_89, %c0_90] : memref<1x3x4x128xf32, #tpu.memory_space<vmem>>, vector<1x1x1x128xf32>
    %94 = vector.shape_cast %93 : vector<1x1x1x128xf32> to vector<128xf32>
    %95 = arith.mulf %73, %73 : vector<2x128xf32>
    %cst_91 = arith.constant dense<0.000000e+00> : vector<128xf32>
    %96 = vector.multi_reduction <add>, %95, %cst_91 [0] : vector<2x128xf32> to vector<128xf32>
    %97 = arith.addf %94, %96 : vector<128xf32>
    %c0_92 = arith.constant 0 : index
    %c2_93 = arith.constant 2 : index
    %c1_94 = arith.constant 1 : index
    %c0_95 = arith.constant 0 : index
    %98 = vector.load %arg4[%c0_92, %c2_93, %c1_94, %c0_95] : memref<1x3x4x128xf32, #tpu.memory_space<vmem>>, vector<1x1x1x128xf32>
    %99 = vector.shape_cast %98 : vector<1x1x1x128xf32> to vector<128xf32>
    %100 = vector.shape_cast %97 : vector<128xf32> to vector<1x1x1x128xf32>
    tpu.vector_store %arg4[%c0_92, %c2_93, %c1_94, %c0_95], %100 {strides = array<i32>} : memref<1x3x4x128xf32, #tpu.memory_space<vmem>>, vector<1x1x1x128xf32>,
    %c0_96 = arith.constant 0 : index
    %c2_97 = arith.constant 2 : index
    %c0_98 = arith.constant 0 : index
    %c0_99 = arith.constant 0 : index
    %101 = vector.load %arg2[%c0_96, %c2_97, %c0_98, %c0_99] : memref<1x4x2x128xf32, #tpu.memory_space<vmem>>, vector<1x1x2x128xf32>
    %102 = vector.shape_cast %101 : vector<1x1x2x128xf32> to vector<2x128xf32>
    %103 = arith.subf %102, %15 : vector<2x128xf32>
    %104 = math.exp %103 : vector<2x128xf32>
    %105 = arith.mulf %104, %36 : vector<2x128xf32>
    %c2_i32 = arith.constant 2 : i32
    %106 = vector.broadcast %c2_i32 : i32 to vector<2x128xi32>
    %107 = arith.cmpi eq, %4, %106 : vector<2x128xi32>
    %108 = arith.extui %107 : vector<2x128xi1> to vector<2x128xi32>
    %109 = arith.sitofp %108 : vector<2x128xi32> to vector<2x128xf32>
    %c0_100 = arith.constant 0 : index
    %c0_101 = arith.constant 0 : index
    %c2_102 = arith.constant 2 : index
    %c0_103 = arith.constant 0 : index
    %110 = vector.load %arg4[%c0_100, %c0_101, %c2_102, %c0_103] : memref<1x3x4x128xf32, #tpu.memory_space<vmem>>, vector<1x1x1x128xf32>
    %111 = vector.shape_cast %110 : vector<1x1x1x128xf32> to vector<128xf32>
    %112 = arith.mulf %105, %109 : vector<2x128xf32>
    %cst_104 = arith.constant dense<0.000000e+00> : vector<128xf32>
    %113 = vector.multi_reduction <add>, %112, %cst_104 [0] : vector<2x128xf32> to vector<128xf32>
    %114 = arith.addf %111, %113 : vector<128xf32>
    %c0_105 = arith.constant 0 : index
    %c0_106 = arith.constant 0 : index
    %c2_107 = arith.constant 2 : index
    %c0_108 = arith.constant 0 : index
    %115 = vector.load %arg4[%c0_105, %c0_106, %c2_107, %c0_108] : memref<1x3x4x128xf32, #tpu.memory_space<vmem>>, vector<1x1x1x128xf32>
    %116 = vector.shape_cast %115 : vector<1x1x1x128xf32> to vector<128xf32>
    %117 = vector.shape_cast %114 : vector<128xf32> to vector<1x1x1x128xf32>
    tpu.vector_store %arg4[%c0_105, %c0_106, %c2_107, %c0_108], %117 {strides = array<i32>} : memref<1x3x4x128xf32, #tpu.memory_space<vmem>>, vector<1x1x1x128xf32>,
    %c0_109 = arith.constant 0 : index
    %c1_110 = arith.constant 1 : index
    %c2_111 = arith.constant 2 : index
    %c0_112 = arith.constant 0 : index
    %118 = vector.load %arg4[%c0_109, %c1_110, %c2_111, %c0_112] : memref<1x3x4x128xf32, #tpu.memory_space<vmem>>, vector<1x1x1x128xf32>
    %119 = vector.shape_cast %118 : vector<1x1x1x128xf32> to vector<128xf32>
    %cst_113 = arith.constant dense<0.000000e+00> : vector<128xf32>
    %120 = vector.multi_reduction <add>, %109, %cst_113 [0] : vector<2x128xf32> to vector<128xf32>
    %121 = arith.addf %119, %120 : vector<128xf32>
    %c0_114 = arith.constant 0 : index
    %c1_115 = arith.constant 1 : index
    %c2_116 = arith.constant 2 : index
    %c0_117 = arith.constant 0 : index
    %122 = vector.load %arg4[%c0_114, %c1_115, %c2_116, %c0_117] : memref<1x3x4x128xf32, #tpu.memory_space<vmem>>, vector<1x1x1x128xf32>
    %123 = vector.shape_cast %122 : vector<1x1x1x128xf32> to vector<128xf32>
    %124 = vector.shape_cast %121 : vector<128xf32> to vector<1x1x1x128xf32>
    tpu.vector_store %arg4[%c0_114, %c1_115, %c2_116, %c0_117], %124 {strides = array<i32>} : memref<1x3x4x128xf32, #tpu.memory_space<vmem>>, vector<1x1x1x128xf32>,
    %c0_118 = arith.constant 0 : index
    %c2_119 = arith.constant 2 : index
    %c2_120 = arith.constant 2 : index
    %c0_121 = arith.constant 0 : index
    %125 = vector.load %arg4[%c0_118, %c2_119, %c2_120, %c0_121] : memref<1x3x4x128xf32, #tpu.memory_space<vmem>>, vector<1x1x1x128xf32>
    %126 = vector.shape_cast %125 : vector<1x1x1x128xf32> to vector<128xf32>
    %127 = arith.mulf %105, %105 : vector<2x128xf32>
    %cst_122 = arith.constant dense<0.000000e+00> : vector<128xf32>
    %128 = vector.multi_reduction <add>, %127, %cst_122 [0] : vector<2x128xf32> to vector<128xf32>
    %129 = arith.addf %126, %128 : vector<128xf32>
    %c0_123 = arith.constant 0 : index
    %c2_124 = arith.constant 2 : index
    %c2_125 = arith.constant 2 : index
    %c0_126 = arith.constant 0 : index
    %130 = vector.load %arg4[%c0_123, %c2_124, %c2_125, %c0_126] : memref<1x3x4x128xf32, #tpu.memory_space<vmem>>, vector<1x1x1x128xf32>
    %131 = vector.shape_cast %130 : vector<1x1x1x128xf32> to vector<128xf32>
    %132 = vector.shape_cast %129 : vector<128xf32> to vector<1x1x1x128xf32>
    tpu.vector_store %arg4[%c0_123, %c2_124, %c2_125, %c0_126], %132 {strides = array<i32>} : memref<1x3x4x128xf32, #tpu.memory_space<vmem>>, vector<1x1x1x128xf32>,
    %c0_127 = arith.constant 0 : index
    %c3_128 = arith.constant 3 : index
    %c0_129 = arith.constant 0 : index
    %c0_130 = arith.constant 0 : index
    %133 = vector.load %arg2[%c0_127, %c3_128, %c0_129, %c0_130] : memref<1x4x2x128xf32, #tpu.memory_space<vmem>>, vector<1x1x2x128xf32>
    %134 = vector.shape_cast %133 : vector<1x1x2x128xf32> to vector<2x128xf32>
    %135 = arith.subf %134, %15 : vector<2x128xf32>
    %136 = math.exp %135 : vector<2x128xf32>
    %137 = arith.mulf %136, %36 : vector<2x128xf32>
    %c3_i32 = arith.constant 3 : i32
    %138 = vector.broadcast %c3_i32 : i32 to vector<2x128xi32>
    %139 = arith.cmpi eq, %4, %138 : vector<2x128xi32>
    %140 = arith.extui %139 : vector<2x128xi1> to vector<2x128xi32>
    %141 = arith.sitofp %140 : vector<2x128xi32> to vector<2x128xf32>
    %c0_131 = arith.constant 0 : index
    %c0_132 = arith.constant 0 : index
    %c3_133 = arith.constant 3 : index
    %c0_134 = arith.constant 0 : index
    %142 = vector.load %arg4[%c0_131, %c0_132, %c3_133, %c0_134] : memref<1x3x4x128xf32, #tpu.memory_space<vmem>>, vector<1x1x1x128xf32>
    %143 = vector.shape_cast %142 : vector<1x1x1x128xf32> to vector<128xf32>
    %144 = arith.mulf %137, %141 : vector<2x128xf32>
    %cst_135 = arith.constant dense<0.000000e+00> : vector<128xf32>
    %145 = vector.multi_reduction <add>, %144, %cst_135 [0] : vector<2x128xf32> to vector<128xf32>
    %146 = arith.addf %143, %145 : vector<128xf32>
    %c0_136 = arith.constant 0 : index
    %c0_137 = arith.constant 0 : index
    %c3_138 = arith.constant 3 : index
    %c0_139 = arith.constant 0 : index
    %147 = vector.load %arg4[%c0_136, %c0_137, %c3_138, %c0_139] : memref<1x3x4x128xf32, #tpu.memory_space<vmem>>, vector<1x1x1x128xf32>
    %148 = vector.shape_cast %147 : vector<1x1x1x128xf32> to vector<128xf32>
    %149 = vector.shape_cast %146 : vector<128xf32> to vector<1x1x1x128xf32>
    tpu.vector_store %arg4[%c0_136, %c0_137, %c3_138, %c0_139], %149 {strides = array<i32>} : memref<1x3x4x128xf32, #tpu.memory_space<vmem>>, vector<1x1x1x128xf32>,
    %c0_140 = arith.constant 0 : index
    %c1_141 = arith.constant 1 : index
    %c3_142 = arith.constant 3 : index
    %c0_143 = arith.constant 0 : index
    %150 = vector.load %arg4[%c0_140, %c1_141, %c3_142, %c0_143] : memref<1x3x4x128xf32, #tpu.memory_space<vmem>>, vector<1x1x1x128xf32>
    %151 = vector.shape_cast %150 : vector<1x1x1x128xf32> to vector<128xf32>
    %cst_144 = arith.constant dense<0.000000e+00> : vector<128xf32>
    %152 = vector.multi_reduction <add>, %141, %cst_144 [0] : vector<2x128xf32> to vector<128xf32>
    %153 = arith.addf %151, %152 : vector<128xf32>
    %c0_145 = arith.constant 0 : index
    %c1_146 = arith.constant 1 : index
    %c3_147 = arith.constant 3 : index
    %c0_148 = arith.constant 0 : index
    %154 = vector.load %arg4[%c0_145, %c1_146, %c3_147, %c0_148] : memref<1x3x4x128xf32, #tpu.memory_space<vmem>>, vector<1x1x1x128xf32>
    %155 = vector.shape_cast %154 : vector<1x1x1x128xf32> to vector<128xf32>
    %156 = vector.shape_cast %153 : vector<128xf32> to vector<1x1x1x128xf32>
    tpu.vector_store %arg4[%c0_145, %c1_146, %c3_147, %c0_148], %156 {strides = array<i32>} : memref<1x3x4x128xf32, #tpu.memory_space<vmem>>, vector<1x1x1x128xf32>,
    %c0_149 = arith.constant 0 : index
    %c2_150 = arith.constant 2 : index
    %c3_151 = arith.constant 3 : index
    %c0_152 = arith.constant 0 : index
    %157 = vector.load %arg4[%c0_149, %c2_150, %c3_151, %c0_152] : memref<1x3x4x128xf32, #tpu.memory_space<vmem>>, vector<1x1x1x128xf32>
    %158 = vector.shape_cast %157 : vector<1x1x1x128xf32> to vector<128xf32>
    %159 = arith.mulf %137, %137 : vector<2x128xf32>
    %cst_153 = arith.constant dense<0.000000e+00> : vector<128xf32>
    %160 = vector.multi_reduction <add>, %159, %cst_153 [0] : vector<2x128xf32> to vector<128xf32>
    %161 = arith.addf %158, %160 : vector<128xf32>
    %c0_154 = arith.constant 0 : index
    %c2_155 = arith.constant 2 : index
    %c3_156 = arith.constant 3 : index
    %c0_157 = arith.constant 0 : index
    %162 = vector.load %arg4[%c0_154, %c2_155, %c3_156, %c0_157] : memref<1x3x4x128xf32, #tpu.memory_space<vmem>>, vector<1x1x1x128xf32>
    %163 = vector.shape_cast %162 : vector<1x1x1x128xf32> to vector<128xf32>
    %164 = vector.shape_cast %161 : vector<128xf32> to vector<1x1x1x128xf32>
    tpu.vector_store %arg4[%c0_154, %c2_155, %c3_156, %c0_157], %164 {strides = array<i32>} : memref<1x3x4x128xf32, #tpu.memory_space<vmem>>, vector<1x1x1x128xf32>,
    return
  }
  func.func @transform_0(%arg0: i32, %arg1: i32) -> (i32, i32, i32, i32) {
    %c0_i32 = arith.constant 0 : i32
    %c0_i32_0 = arith.constant 0 : i32
    %c0_i32_1 = arith.constant 0 : i32
    return %arg0, %c0_i32, %arg1, %c0_i32_0 : i32, i32, i32, i32
  }
  func.func @transform_1(%arg0: i32, %arg1: i32) -> (i32, i32, i32, i32) {
    %c0_i32 = arith.constant 0 : i32
    %c0_i32_0 = arith.constant 0 : i32
    %c0_i32_1 = arith.constant 0 : i32
    return %arg0, %c0_i32, %arg1, %c0_i32_0 : i32, i32, i32, i32
  }
  func.func @transform_2(%arg0: i32, %arg1: i32) -> (i32, i32, i32, i32) {
    %c0_i32 = arith.constant 0 : i32
    %c0_i32_0 = arith.constant 0 : i32
    %c0_i32_1 = arith.constant 0 : i32
    %c0_i32_2 = arith.constant 0 : i32
    return %arg0, %c0_i32, %c0_i32_0, %c0_i32_1 : i32, i32, i32, i32
  }
}

</mosaic_0001>

<bundles_post_ra>
// kernel: tpu_custom_call.1
= control target key start
LH: loop header
LB: loop body
LE: loop exit
PB: predicated region body
PF: predicated region fallthrough
CT: control target
= control target key end

     0   :  { %7 = vsyncpa [#allocation3], 0  ;;  %s1120_s0 = inlined_call_operand.hbm [shape: f32[2,4,2,128], index: 0, kind: input, shape index: {}]   ;;  %s1121_s1 = inlined_call_operand.hbm [shape: s32[2,1,2,128], index: 1, kind: input, shape index: {}]   ;;  %s1122_s2 = inlined_call_operand.hbm [shape: f32[2,3,4,128], index: 2, kind: output, shape index: {}]  }
   0x1   :  { %9 = vsyncpa [#allocation3 + $0x1], 0 }
   0x2   :  { %10 = vsyncpa [#allocation6], 0 }
   0x3   :  { %12 = vsyncpa [#allocation6 + $0x1], 0 }
   0x4   :  { %13 = vsyncpa [#allocation4], 0 }
   0x5   :  { %15 = vsyncpa [#allocation4 + $0x1], 0  ;;  %s835_s9 = smov 0   ;;  %s837_s10 = smov 0  }
   0x6   :  { %s839_s11 = smov 0   ;;  %s841_s12 = smov 0  }
   0x7   :  { %s843_s13 = smov 0   ;;  %s845_s14 = smov 0  }
   0x8 LB: > { %s532_s15 = sadd.s32 4294967295, %s810_s14   ;;  %s533_s16 = sadd.s32 4294967294, %s810_s14   ;;  %s810_s14 = sphi %s845_s14, %s21_s14   ;;  %s806_s13 = sphi %s843_s13, %s1141_s13   ;;  %s802_s12 = sphi %s841_s12, %s1140_s12   ;;  %s798_s11 = sphi %s839_s11, %s1139_s11   ;;  %s794_s10 = sphi %s837_s10, %s1138_s10   ;;  %s790_s9 = sphi %s835_s9, %s1137_s9  }
   0x9   : > { %s33_s17 = sadd.s32 1, %s806_s13  ;;  %s42_s18 = sadd.s32 1, %s798_s11 }
   0xa   : > { %p35_p0 = scmp.ge.s32.totalorder %s33_s17, 2  ;;  %p49_p1 = scmp.ne.s32.totalorder %s798_s11, %s794_s10 }
   0xb   : > { %p50_p2 = scmp.eq.s32.totalorder %s810_s14, 0  ;;  %p55_p3 = scmp.ne.s32.totalorder %s794_s10, %s790_s9 }
   0xc   : > { %s1143_s17 = smov (%p35_p0, %s33_s17), 0  ;;  %p56_p5 = scmp.eq.s32.totalorder %s532_s15, 0 }
   0xd   : > { %p876_p4 = por %p50_p2, %p49_p1  ;;  %s37_s20 = ssub.s32 %s806_s13, %s1143_s17 }
   0xe   : > { %p107_p6 = scmp.eq.s32.totalorder %s532_s15, 1  ;;  %p40_p7 = scmp.eq.s32.totalorder %s37_s20, 0 }
   0xf   : > { %p882_p8 = por %p56_p5, %p55_p3  ;;  %p113_p10 = scmp.eq.s32.totalorder %s533_s16, 1 }
  0x10   : > { %p886_p9 = por %p107_p6, %p49_p1  ;;  %p593_p13 = scmp.lt.s32.totalorder %s810_s14, 2 }
  0x11   : > { %s1126_s21 = scalar_select %p882_p8, 1, 0 }
  0x12   : > { %s1127_s22 = scalar_select %p886_p9, 1, 0 }
  0x13   : > { %s891_s23 = scalar_select %p40_p7, %s798_s11, %s42_s18  }
  0x14   : > { %p893_p11 = por %p113_p10, %p55_p3  ;;  %s900_s25 = sand.u32 1, %s798_s11  }
  0x15   : > { %s536_s26 = sshll.u32 %s900_s25, 3  ;;  %s573_s27 = sshll.u32 %s806_s13, 7 }
  0x16   : > { %s1128_s24 = scalar_select %p893_p11, 1, 0 }
  0x17   : > { %s907_s30 = scalar_lea.hbm %s1120_s0, %s573_s27  ;;  %s137_s3 = scalar_lea.vmem [#allocation2], %s536_s26 }
  0x18   : > { %s145_s4 = sshll.u32 %s137_s3, 4  ;;  %p913_p0 = pnand %p593_p13, %p876_p4  ;;  %s909_s4 = int_to_ptr.vmem [resolvable:$true] %s145_s4 }
  0x19   : > { %s134_s6 = scalar_lea.sflag [#allocation3], %s900_s25  ;;  %s664_s7 = scalar_lea.hbm %s907_s30, 128 }
  0x1a   : > { %p665_p2 = scmp.ne.s32.totalorder %s907_s30, %s664_s7  ;;  %p666_p3 = pneg %p913_p0 }
  0x1b   : > { %s669_s16 = scalar_lea.hbm %s1120_s0, 256  ;;  %p670_p4 = scmp.lt.u32.totalorder %s907_s30, %s1120_s0 }
  0x1c   : > { %p667_p5 = pnand %p666_p3, %p665_p2  ;;  %p671_p7 = scmp.lt.u32.totalorder %s669_s16, %s664_s7 }
  0x1d   : > { %p673_p13 = scmp.lt.u32.totalorder %s664_s7, %s907_s30 }
  0x1e   : > { %p668_p6 = pneg %p667_p5  ;;  %p672_p10 = por %p671_p7, %p670_p4 }
  0x20   : > { %p674_p12 = por %p673_p13, %p672_p10 }
  0x22   : > { %p675_p1 = pnand %p674_p12, %p668_p6 }
  0x24   : > { %678 = shalt.err (!%p675_p1)
}
  0x25   : > { %s679_s20 = scalar_lea.vmem %s909_s4, 128  ;;  %s812_s26 = smov [#allocation2]  }
  0x26   : > { %p680_p2 = scmp.ne.s32.totalorder %s909_s4, %s679_s20  ;;  %s684_s27 = sshll.u32 %s812_s26, 4  ;;  %s685_s27 = int_to_ptr.vmem [resolvable:$false] %s684_s27 }
  0x27   : > { %s686_s28 = scalar_lea.vmem %s685_s27, 256  ;;  %p687_p9 = scmp.lt.s32.totalorder %s909_s4, %s685_s27 }
  0x28   : > { %p682_p5 = pnand %p680_p2, %p666_p3  ;;  %p688_p4 = scmp.lt.s32.totalorder %s686_s28, %s679_s20 }
  0x2a   : > { %p683_p11 = pneg %p682_p5  ;;  %p689_p7 = por %p688_p4, %p687_p9 }
  0x2c   : > { %p690_p10 = pnand %p689_p7, %p683_p11 }
  0x2e   : > { %693 = shalt.err (!%p690_p10)
}
  0x2f   : > { %s813_s29 = smov 32   ;;  %s814_s3 = smov 2  }
  0x30   : > { %585 = dma.hbm_to_vmem [thread:$0]  (!%p913_p0), %s907_s30, 128, %s909_s4, %s134_s6, %s813_s29, %s813_s29, %s814_s3  }
  0x31   : > { %p172_p12 = scmp.lt.s32.totalorder %s810_s14, 3  ;;  %s539_s7 = sshll.u32 %s900_s25, 1 }
  0x32   : > { %s540_s8 = sshll.u32 %s806_s13, 5  ;;  %p1130_p9 = scmp.ge.s32.totalorder %s810_s14, 1 }
  0x33   : > { %s958_s19 = scalar_lea.hbm %s1121_s1, %s540_s8  ;;  %s159_s20 = scalar_lea.vmem [#allocation5], %s539_s7 }
  0x34   : > { %p951_p11 = pnand %p1130_p9, %p172_p12  ;;  %s167_s26 = sshll.u32 %s159_s20, 4  ;;  %s168_s26 = int_to_ptr.vmem [resolvable:$true] %s167_s26 }
  0x35   : > { %s156_s30 = scalar_lea.sflag [#allocation6], %s900_s25  ;;  %s694_s4 = scalar_lea.hbm %s958_s19, 32 }
  0x36   : > { %s1131_s15 = scalar_select %p951_p11, 1, 0 }
  0x37   : > { %p695_p1 = scmp.ne.s32.totalorder %s958_s19, %s694_s4  ;;  %s699_s28 = scalar_lea.hbm %s1121_s1, 64 }
  0x38   : > { %p700_p2 = scmp.lt.u32.totalorder %s958_s19, %s1121_s1  ;;  %p701_p5 = scmp.lt.u32.totalorder %s699_s28, %s694_s4 }
  0x39   : > { %p697_p6 = pnand %p695_p1, %p666_p3  ;;  %p703_p7 = scmp.lt.u32.totalorder %s694_s4, %s958_s19 }
  0x3a   : > { %p702_p4 = por %p701_p5, %p700_p2 }
  0x3b   : > { %p698_p13 = pneg %p697_p6 }
  0x3c   : > { %p704_p10 = por %p703_p7, %p702_p4 }
  0x3e   : > { %p705_p12 = pnand %p704_p10, %p698_p13 }
  0x40   : > { %708 = shalt.err (!%p705_p12)
}
  0x41   : > { %s709_s25 = scalar_lea.vmem %s168_s26, 32  ;;  %s815_s7 = smov [#allocation5]  }
  0x42   : > { %p710_p9 = scmp.ne.s32.totalorder %s168_s26, %s709_s25  ;;  %s714_s8 = sshll.u32 %s815_s7, 4  ;;  %s715_s8 = int_to_ptr.vmem [resolvable:$false] %s714_s8 }
  0x43   : > { %s716_s16 = scalar_lea.vmem %s715_s8, 64  ;;  %p717_p8 = scmp.lt.s32.totalorder %s168_s26, %s715_s8 }
  0x44   : > { %p712_p1 = pnand %p710_p9, %p666_p3  ;;  %p718_p11 = scmp.lt.s32.totalorder %s716_s16, %s709_s25 }
  0x46   : > { %p713_p6 = pneg %p712_p1  ;;  %p719_p2 = por %p718_p11, %p717_p8 }
  0x48   : > { %p720_p5 = pnand %p719_p2, %p713_p6 }
  0x4a   : > { %723 = shalt.err (!%p720_p5)
}
  0x4b   : > { %588 = dma.hbm_to_vmem [thread:$0]  (!%p913_p0), %s958_s19, 32, %s168_s26, %s156_s30  }
  0x4c   : > { %p1132_p13 = scmp.ne.s32.totalorder %s1131_s15, 0 }
  0x4d   : > { %s983_s18 = sand.u32 (!%p1132_p13), 1, %s794_s10   ;;  %p1133_p8 = scmp.ne.s32.totalorder (!%p1132_p13), %s1126_s21, 0 }
  0x4e   : > { %176 = sbr.rel (%p1132_p13) target bundleno = 168 (0xa8), region = 28  ;;  %s542_s20 = sshll.u32 (!%p1132_p13), %s983_s18, 3 }
  0x4f   : > { %s179_s4 = scalar_lea.sflag (!%p1132_p13), [#allocation3], %s983_s18  ;;  %s987_s6 = scalar_lea.vmem (!%p1132_p13), [#allocation2], %s542_s20 }
  0x55   : > { %777 = dma.done.wait (%p1133_p8), %s179_s4, 128  }
  0x56   : > { %779 = vsyncadd (%p1133_p8), %s179_s4, 4294967168  ;;  %s543_s5 = sshll.u32 %s983_s18, 1  ;;  %s188_s15 = scalar_lea.sflag [#allocation6], %s983_s18 }
  0x57   : > { %s191_s19 = scalar_lea.vmem [#allocation5], %s543_s5 }
  0x58   : > { %781 = dma.done.wait (%p1133_p8), %s188_s15, 32  }
  0x59   : > { %783 = vsyncadd (%p1133_p8), %s188_s15, 4294967264  ;;  %s574_s26 = smul.u32 12, %s983_s18  ;;  %v816_v0 = vmov 0.0   ;;  %vm258_vm0 = vcmask 1041408   ;;  %v224_v1 = vld [vmem:[%s191_s19] sm:$0x3] }
  0x5a   : > { %v225_v2 = vld [vmem:[%s987_s6] sm:$0x3]  ;;  %v544_v3 = vld [vmem:[%s987_s6 + $0x2] sm:$0x3]  ;;  %v545_v5 = vld [vmem:[%s987_s6 + $0x4] sm:$0x3] }
  0x5b   : > { %s1000_s30 = scalar_lea.vmem [#allocation7], %s574_s26  ;;  %v228_v4 = vmax.f32 %v225_v2, %v544_v3  ;;  %vm253_vm1 = vcmp.eq.s32.totalorder %v224_v1, 0  ;;  %vm296_vm2 = vcmp.eq.s32.totalorder %v224_v1, 1  ;;  %v546_v6 = vld [vmem:[%s987_s6 + $0x6] sm:$0x3]  ;;  %vm336_vm3 = vcmp.eq.s32.totalorder %v224_v1, 2 }
  0x5c   : > { %221 = vst [vmem:[%s1000_s30] sm:$0xf] %v816_v0  ;;  %222 = vst [vmem:[%s1000_s30 + $0x4] sm:$0xf] %v816_v0  ;;  %v1009_v7 = vsel %vm253_vm1, 1.0, %v816_v0  ;;  %v1011_v8 = vsel %vm296_vm2, 1.0, %v816_v0  ;;  %vm376_vm4 = vcmp.eq.s32.totalorder %v224_v1, 3 }
  0x5d   : > { %223 = vst [vmem:[%s1000_s30 + $0x8] sm:$0xf] %v816_v0  ;;  %v231_v9 = vmax.f32 %v228_v4, %v545_v5  ;;  %v270_v10 = vsel %vm258_vm0, %v1009_v7, 0.0  ;;  %v311_v11 = vsel %vm258_vm0, %v1011_v8, 0.0  ;;  %v1017_v29 = vsel %vm336_vm3, 1.0, %v816_v0  ;;  %s575_s21 = smul.u32 192, %s802_s12 }
  0x5e   : > { %v271_v12 = vrot.slane %v270_v10, 4  ;;  %v312_v13 = vrot.slane %v311_v11, 4  ;;  %v351_v30 = vsel %vm258_vm0, %v1017_v29, 0.0  ;;  %v1021_v31 = vsel %vm376_vm4, 1.0, %v816_v0  ;;  %v552_v39 = vld [vmem:[%s987_s6 + $0x2] sm:$0x3] }
  0x5f   : > { %v234_v14 = vmax.f32 %v231_v9, %v546_v6  ;;  %v352_v34 = vrot.slane %v351_v30, 4  ;;  %v391_v37 = vsel %vm258_vm0, %v1021_v31, 0.0  ;;  %v558_v42 = vld [vmem:[%s987_s6 + $0x4] sm:$0x3]  ;;  %v564_v47 = vld [vmem:[%s987_s6 + $0x6] sm:$0x3]  ;;  %s1065_s29 = scalar_lea.hbm %s1122_s2, %s575_s21 }
  0x60   : > { %v272_v15 = vadd.f32 %v271_v12, %v270_v10  ;;  %v313_v16 = vadd.f32 %v312_v13, %v311_v11  ;;  %v392_v43 = vrot.slane %v391_v37, 4  ;;  %s425_s27 = sshll.u32 %s1000_s30, 4  ;;  %s412_s3 = scalar_lea.sflag [#allocation4], %s983_s18  ;;  %s1067_s27 = int_to_ptr.vmem [resolvable:$true] %s425_s27 }
  0x61   : > { %v235_v17 = vsub.f32 %v225_v2, %v234_v14  ;;  %v238_v18 = vsub.f32 %v544_v3, %v234_v14  ;;  %v242_v19 = vsub.f32 %v545_v5, %v234_v14  ;;  %v246_v20 = vsub.f32 %v546_v6, %v234_v14  ;;  %s724_s25 = scalar_lea.vmem %s1067_s27, 192  ;;  %p1134_p3 = scmp.ne.s32.totalorder %s1127_s22, 0 }
  0x62   : > { %v273_v21 = vrot.slane %v272_v15, 2  ;;  %v314_v22 = vrot.slane %v313_v16, 2  ;;  %v353_v41 = vadd.f32 %v352_v34, %v351_v30  ;;  %v292_v48 = vsub.f32 %v552_v39, %v234_v14  ;;  %p725_p0 = scmp.ne.s32.totalorder %s1067_s27, %s724_s25  ;;  %s817_s7 = smov [#allocation7]  }
  0x63   : > { %v236_v23 = vmul.f32 1.442695, %v235_v17  ;;  %v239_v24 = vmul.f32 1.442695, %v238_v18  ;;  %v243_v25 = vmul.f32 1.442695, %v242_v19  ;;  %v393_v49 = vadd.f32 %v392_v43, %v391_v37 }
  0x64   : > { %v247_v26 = vmul.f32 1.442695, %v246_v20  ;;  %v274_v27 = vadd.f32 %v273_v21, %v272_v15  ;;  %v315_v28 = vadd.f32 %v314_v22, %v313_v16  ;;  %v548_v35 = vld [vmem:[%s1000_s30 + $0x4] sm:$0x1]  ;;  %v554_v36 = vld [vmem:[%s1000_s30 + $0x5] sm:$0x1]  ;;  %v332_v50 = vsub.f32 %v558_v42, %v234_v14  ;;  %p726_p11 = pnand %p725_p0, %p1134_p3 }
  0x65   : > { %648 = vpow2.f32 %v236_v23  ;;  %v354_v46 = vrot.slane %v353_v41, 2  ;;  %v372_v52 = vsub.f32 %v564_v47, %v234_v14  ;;  %v394_v53 = vrot.slane %v393_v49, 2  ;;  %v560_v57 = vld [vmem:[%s1000_s30 + $0x6] sm:$0x1]  ;;  %v566_v4 = vld [vmem:[%s1000_s30 + $0x7] sm:$0x1] }
  0x66   : > { %650 = vpow2.f32 %v239_v24  ;;  %v275_v32 = vrot.slane %v274_v27, 1  ;;  %v316_v33 = vrot.slane %v315_v28, 1  ;;  %v293_v56 = vmul.f32 1.442695, %v292_v48  ;;  %p727_p4 = pneg %p726_p11  ;;  %s728_s8 = sshll.u32 %s817_s7, 4  ;;  %s729_s8 = int_to_ptr.vmem [resolvable:$false] %s728_s8 }
  0x67   : > { %652 = vpow2.f32 %v243_v25  ;;  %v355_v51 = vadd.f32 %v354_v46, %v353_v41  ;;  %v395_v58 = vadd.f32 %v394_v53, %v393_v49  ;;  %v333_v60 = vmul.f32 1.442695, %v332_v50  ;;  %s730_s16 = scalar_lea.vmem %s729_s8, 384  ;;  %p731_p7 = scmp.lt.s32.totalorder %s1067_s27, %s729_s8 }
  0x68   : > { %654 = vpow2.f32 %v247_v26  ;;  %v276_v38 = vadd.f32 %v275_v32, %v274_v27  ;;  %v317_v40 = vadd.f32 %v316_v33, %v315_v28  ;;  %v373_v0 = vmul.f32 1.442695, %v372_v52  ;;  %p732_p10 = scmp.lt.s32.totalorder %s730_s16, %s724_s25 }
  0x69   : > { %v356_v54 = vrot.slane %v355_v51, 1  ;;  %v396_v1 = vrot.slane %v395_v58, 1  ;;  %656 = vpow2.f32 %v293_v56 }
  0x6a   : > { %v277_v44 = vadd.f32 %v548_v35, %v276_v38  ;;  %v318_v45 = vadd.f32 %v554_v36, %v317_v40  ;;  %658 = vpow2.f32 %v333_v60  ;;  %p733_p12 = por %p732_p10, %p731_p7 }
  0x6b   : > { %v357_v61 = vadd.f32 %v356_v54, %v355_v51  ;;  %v397_v6 = vadd.f32 %v396_v1, %v395_v58  ;;  %660 = vpow2.f32 %v373_v0 }
  0x6c   : > { %549 = vst [vmem:[%s1000_s30 + $0x4] sm:$0x1] %v277_v44  ;;  %555 = vst [vmem:[%s1000_s30 + $0x5] sm:$0x1] %v318_v45  ;;  %p734_p9 = pnand %p733_p12, %p727_p4 }
  0x6d   : > { %v358_v3 = vadd.f32 %v560_v57, %v357_v61  ;;  %v398_v10 = vadd.f32 %v566_v4, %v397_v6  ;;  %v256_v61 = vld [vmem:[%s1000_s30] sm:$0x1]  ;;  %v556_v4 = vld [vmem:[%s1000_s30 + $0x9] sm:$0x1] }
  0x6f   : > { %v649_v55 = vpop.eup %648  ;;  %561 = vst [vmem:[%s1000_s30 + $0x6] sm:$0x1] %v358_v3  ;;  %567 = vst [vmem:[%s1000_s30 + $0x7] sm:$0x1] %v398_v10  ;;  %v299_v3 = vld [vmem:[%s1000_s30 + $0x1] sm:$0x1] }
  0x70   : > { %v651_v59 = vpop.eup %650 }
  0x71   : > { %v653_v62 = vpop.eup %652  ;;  %v241_v63 = vadd.f32 %v651_v59, %v649_v55 }
  0x72   : > { %v655_v2 = vpop.eup %654 }
  0x73   : > { %v245_v5 = vadd.f32 %v653_v62, %v241_v63  ;;  %v657_v11 = vpop.eup %656 }
  0x74   : > { %v659_v12 = vpop.eup %658 }
  0x75   : > { %v249_v9 = vadd.f32 %v655_v2, %v245_v5  ;;  %v661_v13 = vpop.eup %660  ;;  %v550_v2 = vld [vmem:[%s1000_s30 + $0x8] sm:$0x1] }
  0x77   : > { %662 = vrcp.f32 %v249_v9 }
  0x81   : > { %v663_v14 = vpop.eup %662 }
  0x82   : > { %v252_v15 = vmul.f32 %v663_v14, %v649_v55  ;;  %v295_v16 = vmul.f32 %v663_v14, %v657_v11  ;;  %v335_v17 = vmul.f32 %v663_v14, %v659_v12  ;;  %v375_v18 = vmul.f32 %v663_v14, %v661_v13 }
  0x84   : > { %v257_v19 = vmul.f32 %v1009_v7, %v252_v15  ;;  %v281_v20 = vmul.f32 %v252_v15, %v252_v15  ;;  %v300_v21 = vmul.f32 %v1011_v8, %v295_v16  ;;  %v321_v22 = vmul.f32 %v295_v16, %v295_v16  ;;  %v339_v15 = vld [vmem:[%s1000_s30 + $0x2] sm:$0x1] }
  0x85   : > { %v340_v23 = vmul.f32 %v1017_v29, %v335_v17  ;;  %v361_v24 = vmul.f32 %v335_v17, %v335_v17  ;;  %v380_v25 = vmul.f32 %v1021_v31, %v375_v18  ;;  %v401_v26 = vmul.f32 %v375_v18, %v375_v18 }
  0x86   : > { %v259_v27 = vsel %vm258_vm0, %v257_v19, 0.0  ;;  %v282_v28 = vsel %vm258_vm0, %v281_v20, 0.0  ;;  %v301_v30 = vsel %vm258_vm0, %v300_v21, 0.0  ;;  %v322_v32 = vsel %vm258_vm0, %v321_v22, 0.0 }
  0x87   : > { %v260_v33 = vrot.slane %v259_v27, 4  ;;  %v283_v7 = vrot.slane %v282_v28, 4  ;;  %v302_v34 = vrot.slane %v301_v30, 4  ;;  %v323_v35 = vrot.slane %v322_v32, 4 }
  0x88   : > { %v341_v8 = vsel %vm258_vm0, %v340_v23, 0.0  ;;  %v362_v29 = vsel %vm258_vm0, %v361_v24, 0.0  ;;  %v381_v36 = vsel %vm258_vm0, %v380_v25, 0.0  ;;  %v402_v31 = vsel %vm258_vm0, %v401_v26, 0.0  ;;  %v562_v24 = vld [vmem:[%s1000_s30 + $0xa] sm:$0x1] }
  0x89   : > { %v261_v37 = vadd.f32 %v260_v33, %v259_v27  ;;  %v284_v38 = vadd.f32 %v283_v7, %v282_v28  ;;  %v303_v39 = vadd.f32 %v302_v34, %v301_v30  ;;  %v324_v40 = vadd.f32 %v323_v35, %v322_v32  ;;  %v379_v25 = vld [vmem:[%s1000_s30 + $0x3] sm:$0x1]  ;;  %v568_v26 = vld [vmem:[%s1000_s30 + $0xb] sm:$0x1] }
  0x8a   : > { %v342_v41 = vrot.slane %v341_v8, 4  ;;  %v363_v42 = vrot.slane %v362_v29, 4  ;;  %v382_v43 = vrot.slane %v381_v36, 4  ;;  %v403_v44 = vrot.slane %v402_v31, 4 }
  0x8b   : > { %v262_v45 = vrot.slane %v261_v37, 2  ;;  %v285_v46 = vrot.slane %v284_v38, 2  ;;  %v304_v47 = vrot.slane %v303_v39, 2  ;;  %v325_v48 = vrot.slane %v324_v40, 2 }
  0x8c   : > { %v343_v49 = vadd.f32 %v342_v41, %v341_v8  ;;  %v364_v50 = vadd.f32 %v363_v42, %v362_v29  ;;  %v383_v51 = vadd.f32 %v382_v43, %v381_v36  ;;  %v404_v52 = vadd.f32 %v403_v44, %v402_v31 }
  0x8d   : > { %v263_v53 = vadd.f32 %v262_v45, %v261_v37  ;;  %v286_v54 = vadd.f32 %v285_v46, %v284_v38  ;;  %v305_v55 = vadd.f32 %v304_v47, %v303_v39  ;;  %v326_v56 = vadd.f32 %v325_v48, %v324_v40 }
  0x8e   : > { %v344_v57 = vrot.slane %v343_v49, 2  ;;  %v365_v58 = vrot.slane %v364_v50, 2  ;;  %v384_v59 = vrot.slane %v383_v51, 2  ;;  %v405_v60 = vrot.slane %v404_v52, 2 }
  0x8f   : > { %v264_v62 = vrot.slane %v263_v53, 1  ;;  %v287_v63 = vrot.slane %v286_v54, 1  ;;  %v306_v0 = vrot.slane %v305_v55, 1  ;;  %v327_v1 = vrot.slane %v326_v56, 1 }
  0x90   : > { %v345_v5 = vadd.f32 %v344_v57, %v343_v49  ;;  %v366_v6 = vadd.f32 %v365_v58, %v364_v50  ;;  %v385_v9 = vadd.f32 %v384_v59, %v383_v51  ;;  %v406_v10 = vadd.f32 %v405_v60, %v404_v52 }
  0x91   : > { %v265_v11 = vadd.f32 %v264_v62, %v263_v53  ;;  %v288_v12 = vadd.f32 %v287_v63, %v286_v54  ;;  %v307_v13 = vadd.f32 %v306_v0, %v305_v55  ;;  %v328_v14 = vadd.f32 %v327_v1, %v326_v56 }
  0x92   : > { %v346_v16 = vrot.slane %v345_v5, 1  ;;  %v367_v17 = vrot.slane %v366_v6, 1  ;;  %v386_v18 = vrot.slane %v385_v9, 1  ;;  %v407_v19 = vrot.slane %v406_v10, 1 }
  0x93   : > { %v266_v20 = vadd.f32 %v265_v11, %v256_v61  ;;  %v289_v21 = vadd.f32 %v550_v2, %v288_v12  ;;  %v308_v22 = vadd.f32 %v307_v13, %v299_v3  ;;  %v329_v23 = vadd.f32 %v556_v4, %v328_v14 }
  0x94   : > { %v347_v27 = vadd.f32 %v346_v16, %v345_v5  ;;  %v368_v28 = vadd.f32 %v367_v17, %v366_v6  ;;  %v387_v30 = vadd.f32 %v386_v18, %v385_v9  ;;  %v408_v32 = vadd.f32 %v407_v19, %v406_v10 }
  0x95   : > { %267 = vst [vmem:[%s1000_s30] sm:$0x1] %v266_v20  ;;  %551 = vst [vmem:[%s1000_s30 + $0x8] sm:$0x1] %v289_v21 }
  0x96   : > { %309 = vst [vmem:[%s1000_s30 + $0x1] sm:$0x1] %v308_v22  ;;  %557 = vst [vmem:[%s1000_s30 + $0x9] sm:$0x1] %v329_v23  ;;  %v348_v33 = vadd.f32 %v347_v27, %v339_v15  ;;  %v369_v7 = vadd.f32 %v562_v24, %v368_v28  ;;  %v388_v34 = vadd.f32 %v387_v30, %v379_v25 }
  0x97   : > { %v409_v35 = vadd.f32 %v568_v26, %v408_v32 }
  0x98   : > { %349 = vst [vmem:[%s1000_s30 + $0x2] sm:$0x1] %v348_v33  ;;  %563 = vst [vmem:[%s1000_s30 + $0xa] sm:$0x1] %v369_v7 }
  0x99   : > { %389 = vst [vmem:[%s1000_s30 + $0x3] sm:$0x1] %v388_v34  ;;  %569 = vst [vmem:[%s1000_s30 + $0xb] sm:$0x1] %v409_v35 }
  0x9a   : > { %737 = shalt.err (!%p734_p9)
}
  0x9b   : > { %s738_s20 = scalar_lea.hbm %s1065_s29, 192  ;;  %s742_s5 = scalar_lea.hbm %s1122_s2, 384 }
  0x9c   : > { %p739_p1 = scmp.ne.s32.totalorder %s1065_s29, %s738_s20  ;;  %p743_p5 = scmp.lt.u32.totalorder %s1065_s29, %s1122_s2 }
  0x9d   : > { %p744_p13 = scmp.lt.u32.totalorder %s742_s5, %s738_s20  ;;  %p746_p0 = scmp.lt.u32.totalorder %s738_s20, %s1065_s29 }
  0x9e   : > { %p740_p6 = pnand %p739_p1, %p1134_p3 }
  0x9f   : > { %p745_p8 = por %p744_p13, %p743_p5 }
  0xa0   : > { %p741_p2 = pneg %p740_p6 }
  0xa1   : > { %p747_p11 = por %p746_p0, %p745_p8 }
  0xa3   : > { %p748_p4 = pnand %p747_p11, %p741_p2 }
  0xa5   : > { %751 = shalt.err (!%p748_p4)
}
  0xa6   : > { %s818_s26 = smov 64   ;;  %s819_s30 = smov 4  }
  0xa7   : > { %580 = dma.vmem_to_hbm [thread:$0]  (%p1134_p3), %s1067_s27, 192, %s1065_s29, %s412_s3, %s818_s26, %s818_s26, %s819_s30  }
  0xa8 PF: > { %s440_s21 = sand.u32 1, %s790_s9   ;;  %p1135_p7 = scmp.ne.s32.totalorder %s1128_s24, 0 }
  0xa9   : > { %p1136_p10 = scmp.ge.s32.totalorder %s810_s14, 2  ;;  %s441_s12 = scalar_lea.sflag [#allocation4], %s440_s21 }
  0xab   : > { %p590_p12 = pnand %p1136_p10, %p1135_p7 }
  0xad   : > { %785 = dma.done.wait (!%p590_p12), %s441_s12, 192  }
  0xae   : > { %787 = vsyncadd (!%p590_p12), %s441_s12, 4294967104  ;;  %s21_s14 = sadd.s32 1, %s810_s14   ;;  %s1137_s9 = smov %s794_s10 }
  0xaf   : > { %p18_p9 = scmp.ge.s32.totalorder %s21_s14, 4   ;;  %s1138_s10 = smov %s798_s11 }
  0xb0   : > { %s1139_s11 = smov %s891_s23  ;;  %s1140_s12 = smov %s806_s13 }
  0xb1   : > { %s1141_s13 = smov %s1143_s17  ;;  %20 = sbr.rel (!%p18_p9) target bundleno = 8 (0x8), region = 95 }
  0xb8   :  { %446 = vsyncpa [#allocation3], 1 }
  0xb9   :  { %448 = vsyncpa [#allocation3 + $0x1], 1 }
  0xba   :  { %449 = vsyncpa [#allocation6], 1 }
  0xbb   :  { %451 = vsyncpa [#allocation6 + $0x1], 1 }
  0xbc   :  { %452 = vsyncpa [#allocation4], 1 }
  0xbd   :  { %454 = vsyncpa [#allocation4 + $0x1], 1 }

</bundles_post_ra>
